<compile_context>
chip_gen: v5e
topology: v5e:2x2
jax: 0.10.0
libtpu: 0.0.40
codegen_flags: <defaults>
</compile_context>

<pallas_src>
import functools

import jax
import jax.numpy as jnp
from jax.experimental import pallas as pl
from jax.experimental.pallas import tpu as pltpu


_LANES = 128  # TPU lane width; tiled block's last dim must be a multiple.


def _cdiv(a: int, b: int) -> int:
    return -(-a // b)


def _round_up(x: int, m: int) -> int:
    return ((x + m - 1) // m) * m


def _vmem_config():
    """(vmem_limit_bytes, max_block_bytes) per TPU generation.

    v5e/v6e: 128 MiB physical VMEM -> 8 MiB blocks, 48 MiB scoped limit.
    v7x:     64 MiB per TensorCore (32 MiB scoped default) -> 4 MiB blocks,
             28 MiB scoped limit.  Unknown / unqueryable -> conservative v7x
             numbers (safe on every generation).
    """
    try:
        cap = int(pltpu.get_tpu_info().vmem_capacity_bytes)
    except Exception:  # query unavailable -> be conservative
        cap = 0
    if cap >= 96 * 1024 * 1024:
        return 48 * 1024 * 1024, 8 * 1024 * 1024
    return 28 * 1024 * 1024, 4 * 1024 * 1024


def _pick_tile(total: int, granule: int, max_tile: int, min_tile: int,
               target_tiles: int = 4) -> int:
    """Largest granule-aligned tile covering `total`, capped at max_tile, then
    shrunk (never below min_tile / granule) so the 1-D grid has >= target_tiles
    steps for megacore balance."""
    tile = max(granule, min((max_tile // granule) * granule,
                            _round_up(total, granule)))
    if _cdiv(total, tile) < target_tiles:
        balanced = max(granule, _round_up(_cdiv(total, target_tiles), granule))
        if balanced >= min_tile:
            tile = min(tile, balanced)
    return tile


# ------------------------------------------------------------------ kernels --

def _copy_pad_kernel(x_ref, o_ref, *, n_copy, tile, sample_axis,
                     needs_padding, n_tiles):
    """Grid-tiled clip + zero-pad.

    The grid walks the sample axis (`sample_axis` of the 2-D block) in chunks
    of `tile`.  n_copy / tile / n_tiles / needs_padding are trace-time Python
    ints, so only the branches that can ever trigger are emitted; every grid
    step issues exactly one store to its output tile.
    """
    i = pl.program_id(0)

    if not needs_padding:
        # Pure clipping: every (in-bounds) output element is a copy.  Writes
        # landing past the real array extent in a partial edge block are
        # dropped by Pallas.
        o_ref[...] = x_ref[...]
        return

    n_full = n_copy // tile            # tiles that are 100% copy
    rem = n_copy % tile                # valid samples inside the boundary tile
    n_nonpad = n_full + (1 if rem else 0)

    if n_full > 0:
        @pl.when(i < n_full)
        def _():
            o_ref[...] = x_ref[...]

    if rem > 0:
        @pl.when(i == n_full)
        def _():
            pos = jax.lax.broadcasted_iota(jnp.int32, o_ref.shape, sample_axis)
            x = x_ref[...]
            o_ref[...] = jnp.where(pos < rem, x, jnp.zeros_like(x))

    if n_tiles > n_nonpad:
        @pl.when(i >= n_nonpad)
        def _():
            o_ref[...] = jnp.zeros_like(o_ref)


def _small_kernel(x_ref, o_ref):
    """Single-block fallback for tiny outputs (max_samples < 128).

    The wrapper pre-slices the input to exactly n_copy samples, so this never
    pulls a long waveform into VMEM.
    """
    n_copy = x_ref.shape[-1]
    max_samples = o_ref.shape[-1]
    if n_copy >= max_samples:
        o_ref[...] = x_ref[...]
    else:
        o_ref[:, :n_copy] = x_ref[...]
        o_ref[:, n_copy:] = jnp.zeros(
            (o_ref.shape[0], max_samples - n_copy), o_ref.dtype)


# ------------------------------------------------------------------ wrapper --

def audio_clipping_transform(waveform: jax.Array,
                             max_duration: float,
                             sample_rate: int,
                             *,
                             row_tile: int | None = None,
                             col_tile: int | None = None) -> jax.Array:
    """JAX/Pallas equivalent of AudioClippingTransform.forward.

    row_tile / col_tile are optional explicit tile overrides (in (T/128)-rows
    for the dense path / samples for the column path); None = auto-pick from
    the TPU generation's VMEM budget.
    """
    max_samples = int(max_duration * sample_rate)
    c, t = waveform.shape
    dtype = waveform.dtype
    itemsize = jnp.dtype(dtype).itemsize

    # ---- trivial short-circuits: no kernel launch ---------------------------
    if max_samples == t:
        return waveform                      # identity (clip length == length)
    if max_samples <= 0:
        return waveform[:, :0]
    if t == 0:
        return jnp.zeros((c, max_samples), dtype)

    n_copy = min(t, max_samples)
    needs_padding = max_samples > t

    vmem_limit, max_block_bytes = _vmem_config()
    grid_params = pltpu.CompilerParams(
        dimension_semantics=("parallel",),
        vmem_limit_bytes=vmem_limit)

    # ---- Path 1: lane/sublane-dense slab (free reshape, no copies) ----------
    if (c == 1 and t % _LANES == 0 and max_samples % _LANES == 0
            and max_samples >= 8 * _LANES):
        r_in = t // _LANES
        r_out = max_samples // _LANES
        rows_copy = n_copy // _LANES          # exact: n_copy is 128-aligned
        row_bytes = _LANES * itemsize
        if row_tile is not None:
            rt = max(8, (row_tile // 8) * 8)
        else:
            rt = _pick_tile(r_out, 8,
                            max_tile=max(8, max_block_bytes // row_bytes),
                            min_tile=max(8, (1024 * 1024) // row_bytes))
        n_tiles = _cdiv(r_out, rt)
        last_in_blk = max(_cdiv(max(rows_copy, 1), rt) - 1, 0)

        kernel = functools.partial(
            _copy_pad_kernel, n_copy=rows_copy, tile=rt, sample_axis=0,
            needs_padding=needs_padding, n_tiles=n_tiles)

        out2d = pl.pallas_call(
            kernel,
            out_shape=jax.ShapeDtypeStruct((r_out, _LANES), dtype),
            grid=(n_tiles,),
            in_specs=[pl.BlockSpec(
                (rt, _LANES),
                lambda i: (jnp.minimum(i, last_in_blk), 0))],
            out_specs=pl.BlockSpec((rt, _LANES), lambda i: (i, 0)),
            compiler_params=grid_params,
        )(waveform.reshape(r_in, _LANES))
        return out2d.reshape(1, max_samples)

    # ---- Path 2: column-tiled over the sample axis --------------------------
    if max_samples >= _LANES:
        col_bytes = max(1, c * itemsize)
        if col_tile is not None:
            tile = max(_LANES, (col_tile // _LANES) * _LANES)
        else:
            tile = _pick_tile(
                max_samples, _LANES,
                max_tile=max(_LANES, max_block_bytes // col_bytes),
                min_tile=max(_LANES, (1024 * 1024) // col_bytes))
        n_tiles = _cdiv(max_samples, tile)
        last_in_blk = max(_cdiv(max(n_copy, 1), tile) - 1, 0)

        kernel = functools.partial(
            _copy_pad_kernel, n_copy=n_copy, tile=tile, sample_axis=1,
            needs_padding=needs_padding, n_tiles=n_tiles)

        return pl.pallas_call(
            kernel,
            out_shape=jax.ShapeDtypeStruct((c, max_samples), dtype),
            grid=(n_tiles,),
            in_specs=[pl.BlockSpec(
                (c, tile),
                lambda i: (0, jnp.minimum(i, last_in_blk)))],
            out_specs=pl.BlockSpec((c, tile), lambda i: (0, i)),
            compiler_params=grid_params,
        )(waveform)

    # ---- Path 3: tiny single-block fallback (max_samples < 128) -------------
    # Pre-slice the input so only n_copy (< 128) samples are ever DMA'd, even
    # when the source waveform is huge.
    x_small = waveform[:, :n_copy]
    return pl.pallas_call(
        _small_kernel,
        out_shape=jax.ShapeDtypeStruct((c, max_samples), dtype),
        in_specs=[pl.BlockSpec((c, n_copy), lambda: (0, 0))],
        out_specs=pl.BlockSpec((c, max_samples), lambda: (0, 0)),
    )(x_small)


# -------------------------------------------------------------------- test ---

def _reference(waveform, max_duration, sample_rate):
    ms = int(max_duration * sample_rate)
    c = waveform.shape[0]
    w = waveform[:, :ms]
    if w.shape[1] < ms:
        w = jnp.concatenate([w, jnp.zeros((c, ms - w.shape[1]), w.dtype)],
                            axis=1)
    return w


if __name__ == "__main__":
    key = jax.random.PRNGKey(0)
    keys = jax.random.split(key, 16)

    # (shape, max_duration, sample_rate, kwargs) -- small tile overrides force
    # real multi-tile grids (copy / boundary / pad tiles) at small shapes;
    # override-free cases exercise the auto (generation-aware) tile picker.
    cases = [
        # dense path, padding: copy + boundary + pad tiles (grid = 5)
        ((1, 1280), 40.0, 128, dict(row_tile=8)),
        # dense path, pure clipping, multi-tile (grid = 2)
        ((1, 2560), 16.0, 128, dict(row_tile=8)),
        # dense path, padding, auto tile config
        ((1, 1280), 20.0, 128, {}),
        # column path, padding: copy + boundary + pad tiles (grid = 3)
        ((1, 200), 3.0, 128, dict(col_tile=128)),
        # column path, pure clipping, 2 channels (grid = 2)
        ((2, 500), 2.0, 128, dict(col_tile=128)),
        # column path, padding, 2 channels, auto tile config
        ((2, 300), 4.0, 128, {}),
        # tiny single-block fallback, padding
        ((1, 50), 6.0, 16, {}),
        # tiny single-block fallback, clipping from a much longer waveform
        ((1, 4096), 5.0, 16, {}),
        # identity short-circuit (max_samples == T)
        ((1, 256), 2.0, 128, {}),
    ]

    for idx, (shape, dur, sr, kw) in enumerate(cases):
        w = jax.random.normal(keys[idx], shape, dtype=jnp.float32)
        out = audio_clipping_transform(w, dur, sr, **kw)
        jax.block_until_ready(out)
        ref = _reference(w, dur, sr)
        assert out.shape == ref.shape, (idx, out.shape, ref.shape)
        assert jnp.array_equal(out, ref), f"case {idx} mismatch"

    print("KERNEL_OK")
</pallas_src>

<mosaic_0001>
module attributes {stable_mosaic.version = 11 : i64} {
  func.func @_copy_pad_kernel(%arg0: i32, %arg1: memref<8x128xf32, #tpu.memory_space<vmem>>, %arg2: memref<8x128xf32, #tpu.memory_space<vmem>>) attributes {dimension_semantics = [#tpu.dimension_semantics<parallel>], iteration_bounds = array<i64: 5>, scalar_prefetch = 0 : i64, scratch_operands = 0 : i64, tpu.core_type = #tpu.core_type<tc>, window_params = [{transform_indices = @transform_0, window_bounds = array<i64: 8, 128>}, {transform_indices = @transform_1, window_bounds = array<i64: 8, 128>}]} {
    %c1_i32 = arith.constant 1 : i32
    %0 = arith.cmpi slt, %arg0, %c1_i32 : i32
    %1 = arith.extui %0 : i1 to i32
    %c0_i32 = arith.constant 0 : i32
    %2 = arith.cmpi ne, %1, %c0_i32 : i32
    scf.if %2 {
      %c0 = arith.constant 0 : index
      %c0_3 = arith.constant 0 : index
      %9 = vector.load %arg1[%c0, %c0_3] : memref<8x128xf32, #tpu.memory_space<vmem>>, vector<8x128xf32>
      %c0_4 = arith.constant 0 : index
      %c0_5 = arith.constant 0 : index
      %10 = vector.load %arg2[%c0_4, %c0_5] : memref<8x128xf32, #tpu.memory_space<vmem>>, vector<8x128xf32>
      tpu.vector_store %arg2[%c0_4, %c0_5], %9 {strides = array<i32>} : memref<8x128xf32, #tpu.memory_space<vmem>>, vector<8x128xf32>,
    } else {
    }
    %c1_i32_0 = arith.constant 1 : i32
    %3 = arith.cmpi eq, %arg0, %c1_i32_0 : i32
    %4 = arith.extui %3 : i1 to i32
    %c0_i32_1 = arith.constant 0 : i32
    %5 = arith.cmpi ne, %4, %c0_i32_1 : i32
    scf.if %5 {
      %9 = tpu.iota {dimensions = array<i32: 0>} : vector<8x128xi32>
      %c0 = arith.constant 0 : index
      %c0_3 = arith.constant 0 : index
      %10 = vector.load %arg1[%c0, %c0_3] : memref<8x128xf32, #tpu.memory_space<vmem>>, vector<8x128xf32>
      %c2_i32_4 = arith.constant 2 : i32
      %11 = vector.broadcast %c2_i32_4 : i32 to vector<8x128xi32>
      %12 = arith.cmpi slt, %9, %11 : vector<8x128xi32>
      %cst = arith.constant 0.000000e+00 : f32
      %13 = vector.broadcast %cst : f32 to vector<8x128xf32>
      %14 = arith.select %12, %10, %13 : vector<8x128xi1>, vector<8x128xf32>
      %c0_5 = arith.constant 0 : index
      %c0_6 = arith.constant 0 : index
      %15 = vector.load %arg2[%c0_5, %c0_6] : memref<8x128xf32, #tpu.memory_space<vmem>>, vector<8x128xf32>
      tpu.vector_store %arg2[%c0_5, %c0_6], %14 {strides = array<i32>} : memref<8x128xf32, #tpu.memory_space<vmem>>, vector<8x128xf32>,
    } else {
    }
    %c2_i32 = arith.constant 2 : i32
    %6 = arith.cmpi sge, %arg0, %c2_i32 : i32
    %7 = arith.extui %6 : i1 to i32
    %c0_i32_2 = arith.constant 0 : i32
    %8 = arith.cmpi ne, %7, %c0_i32_2 : i32
    scf.if %8 {
      %cst = arith.constant 0.000000e+00 : f32
      %9 = vector.broadcast %cst : f32 to vector<8x128xf32>
      %c0 = arith.constant 0 : index
      %c0_3 = arith.constant 0 : index
      %10 = vector.load %arg2[%c0, %c0_3] : memref<8x128xf32, #tpu.memory_space<vmem>>, vector<8x128xf32>
      tpu.vector_store %arg2[%c0, %c0_3], %9 {strides = array<i32>} : memref<8x128xf32, #tpu.memory_space<vmem>>, vector<8x128xf32>,
    } else {
    }
    return
  }
  func.func @transform_0(%arg0: i32) -> (i32, i32) {
    %c1_i32 = arith.constant 1 : i32
    %0 = arith.minsi %arg0, %c1_i32 : i32
    %c0_i32 = arith.constant 0 : i32
    %c0_i32_0 = arith.constant 0 : i32
    return %0, %c0_i32 : i32, i32
  }
  func.func @transform_1(%arg0: i32) -> (i32, i32) {
    %c0_i32 = arith.constant 0 : i32
    %c0_i32_0 = arith.constant 0 : i32
    return %arg0, %c0_i32 : i32, i32
  }
}

</mosaic_0001>

<bundles_post_ra>
// kernel: tpu_custom_call.1
= control target key start
LH: loop header
LB: loop body
LE: loop exit
PB: predicated region body
PF: predicated region fallthrough
CT: control target
= control target key end

     0   :  { %6 = vsyncpa [#allocation3], 0  ;;  %s625_s0 = inlined_call_operand.hbm [shape: f32[10,128], index: 0, kind: input, shape index: {}]   ;;  %s626_s1 = inlined_call_operand.hbm [shape: f32[40,128], index: 1, kind: output, shape index: {}]  }
   0x1   :  { %8 = vsyncpa [#allocation3 + $0x1], 0 }
   0x2   :  { %9 = vsyncpa [#allocation4], 0 }
   0x3   :  { %11 = vsyncpa [#allocation4 + $0x1], 0  ;;  %s469_s6 = smov 0   ;;  %s471_s7 = smov 0  }
   0x4   :  { %s473_s8 = smov 0   ;;  %s475_s9 = smov 0  }
   0x5   :  { %s477_s10 = smov 0   ;;  %s479_s11 = smov 0  }
   0x6   :  { %s481_s12 = smov 0  }
   0x7 LB: > { %s503_s13 = sadd.s32 4294967295, %s456_s12   ;;  %s249_s14 = sadd.s32 4294967294, %s456_s12   ;;  %s456_s12 = sphi %s481_s12, %s638_s12   ;;  %s452_s11 = sphi %s479_s11, %s637_s11   ;;  %s448_s10 = sphi %s477_s10, %s636_s10   ;;  %s444_s9 = sphi %s475_s9, %s635_s9   ;;  %s440_s8 = sphi %s473_s8, %s634_s8   ;;  %s436_s7 = sphi %s471_s7, %s633_s7   ;;  %s432_s6 = sphi %s469_s6, %s632_s6  }
   0x8   : > { %s507_s15 = sadd.s32 1, %s456_s12   ;;  %p21_p0 = scmp.lt.s32.totalorder %s456_s12, 1 }
   0x9   : > { %p23_p1 = scmp.lt.s32.totalorder %s507_s15, 1  ;;  %s28_s16 = sadd.s32 1, %s452_s11 }
   0xa   : > { %s22_s17 = scalar_select %p21_p0, %s456_s12, 1 }
   0xb   : > { %s24_s18 = scalar_select %p23_p1, %s507_s15, 1 }
   0xc   : > { %p35_p2 = scmp.ne.s32.totalorder %s452_s11, %s448_s10  ;;  %p36_p3 = scmp.eq.s32.totalorder %s456_s12, 0 }
   0xd   : > { %s25_s19 = ssub.s32 %s22_s17, %s24_s18  ;;  %p41_p4 = scmp.ne.s32.totalorder %s448_s10, %s444_s9 }
   0xe   : > { %p26_p5 = scmp.eq.s32.totalorder %s25_s19, 0  ;;  %p518_p6 = por %p36_p3, %p35_p2 }
   0xf   : > { %p42_p7 = scmp.eq.s32.totalorder %s503_s13, 0  ;;  %s51_s21 = ssub.s32 %s456_s12, %s507_s15 }
  0x10   : > { %s526_s22 = scalar_select %p26_p5, %s452_s11, %s28_s16  }
  0x11   : > { %p528_p8 = por %p42_p7, %p41_p4  ;;  %p52_p9 = scmp.eq.s32.totalorder %s51_s21, 0 }
  0x12   : > { %s54_s24 = sadd.s32 1, %s440_s8  ;;  %p64_p10 = scmp.ne.s32.totalorder %s440_s8, %s436_s7 }
  0x13   : > { %s536_s25 = scalar_select %p52_p9, %s440_s8, %s54_s24  }
  0x14   : > { %p65_p11 = scmp.eq.s32.totalorder %s503_s13, 4  ;;  %p70_p12 = scmp.ne.s32.totalorder %s436_s7, %s432_s6 }
  0x15   : > { %p71_p13 = scmp.eq.s32.totalorder %s249_s14, 4  ;;  %p277_p1 = scmp.lt.s32.totalorder %s456_s12, 5 }
  0x16   : > { %p541_p0 = por %p65_p11, %p64_p10  ;;  %s91_s28 = sand.u32 1, %s452_s11  }
  0x17   : > { %p546_p2 = por %p71_p13, %p70_p12  ;;  %s252_s29 = sshll.u32 %s91_s28, 3 }
  0x18   : > { %s253_s30 = sshll.u32 %s22_s17, 3  ;;  %s95_s5 = scalar_lea.vmem [#allocation2], %s252_s29 }
  0x19   : > { %s101_s4 = scalar_lea.hbm %s625_s0, %s253_s30  ;;  %s105_s9 = sshll.u32 %s95_s5, 4  ;;  %s106_s9 = int_to_ptr.vmem [resolvable:$true] %s105_s9 }
  0x1a   : > { %s103_s16 = sshll.u32 %s101_s4, 4  ;;  %p556_p3 = pnand %p277_p1, %p518_p6  ;;  %s104_s16 = int_to_ptr.hbm [resolvable:$true] %s103_s16 }
  0x1b   : > { %p254_p4 = scmp.ge.s32.totalorder %s456_s12, 1  ;;  %p110_p5 = scmp.lt.s32.totalorder %s456_s12, 6 }
  0x1c   : > { %s92_s18 = scalar_lea.sflag [#allocation3], %s91_s28  ;;  %s336_s19 = sshra.s32 %s104_s16, 4  ;;  %s337_s19 = int_to_ptr.hbm [resolvable:$true] %s336_s19 }
  0x1d   : > { %s338_s17 = scalar_lea.hbm %s337_s19, 8  ;;  %p340_p9 = pneg %p556_p3 }
  0x1e   : > { %p339_p7 = scmp.ne.s32.totalorder %s337_s19, %s338_s17  ;;  %s343_s20 = scalar_lea.hbm %s625_s0, 16 }
  0x1f   : > { %p344_p6 = scmp.lt.s32.totalorder %s337_s19, %s625_s0  ;;  %p345_p12 = scmp.lt.s32.totalorder %s343_s20, %s338_s17 }
  0x20   : > { %p341_p10 = pnand %p340_p9, %p339_p7 }
  0x21   : > { %p346_p13 = por %p345_p12, %p344_p6 }
  0x22   : > { %p342_p11 = pneg %p341_p10 }
  0x24   : > { %p347_p1 = pnand %p346_p13, %p342_p11 }
  0x26   : > { %350 = shalt.err (!%p347_p1)
}
  0x27   : > { %272 = dma.hbm_to_vmem [thread:$0]  (!%p556_p3), %s104_s16, 128, %s106_s9, %s92_s18  }
  0x28   : > { %p111_p7 = pnand %p254_p4, %p110_p5 }
  0x29   : > { %s116_s28 = sand.u32 (!%p111_p7), 1, %s448_s10  }
  0x2a   : > { %114 = sbr.rel (%p111_p7) target bundleno = 90 (0x5a), region = 24  ;;  %s255_s2 = sshll.u32 (!%p111_p7), %s116_s28, 3 }
  0x2b   : > { %s117_s3 = scalar_lea.sflag (!%p111_p7), [#allocation3], %s116_s28  ;;  %s120_s4 = scalar_lea.vmem (!%p111_p7), [#allocation2], %s255_s2 }
  0x2f   : > { %423 = dma.done.wait (%p528_p8), %s117_s3, 128  }
  0x30   : > { %425 = vsyncadd (%p528_p8), %s117_s3, 4294967168  ;;  %s137_s5 = sand.u32 1, %s436_s7   ;;  %p257_p3 = scmp.ge.s32.totalorder %s503_s13, 1 }
  0x31   : > { %s256_s14 = sshll.u32 %s137_s5, 3 }
  0x32   : > { %s139_s19 = scalar_lea.vmem [#allocation5], %s256_s14  ;;  %145 = sbr.rel (%p257_p3) target bundleno = 57 (0x39), region = 32 }
  0x37   : > { %v146_v0 = vld [vmem:[%s120_s4] sm:$0xff] }
  0x38   : > { %147 = vst [vmem:[%s139_s19] sm:$0xff] %v146_v0 }
  0x39 PF: > { %p258_p4 = scmp.ne.s32.totalorder %s503_s13, 1 }
  0x3b   : > { %151 = sbr.rel (%p258_p4) target bundleno = 66 (0x42), region = 36 }
  0x40   : > { %v259_v1 = vld [vmem:[%s120_s4] sm:$0x3] }
  0x41   : > { %157 = vst [vmem:[%s139_s19] sm:$0xff] %v259_v1 }
  0x42 PF: > { %p260_p5 = scmp.lt.s32.totalorder %s503_s13, 2 }
  0x44   : > { %161 = sbr.rel (%p260_p5) target bundleno = 75 (0x4b), region = 40 }
  0x49   : > { %v458_v2 = vmov 0.0  }
  0x4a   : > { %162 = vst [vmem:[%s139_s19] sm:$0xff] %v458_v2 }
  0x4b PF: > { %s262_s23 = sshll.u32 %s503_s13, 3  ;;  %s176_s17 = sshll.u32 %s139_s19, 4  ;;  %s177_s17 = int_to_ptr.vmem [resolvable:$true] %s176_s17 }
  0x4c   : > { %s174_s18 = scalar_lea.hbm %s626_s1, %s262_s23  ;;  %s164_s24 = scalar_lea.sflag [#allocation4], %s137_s5 }
  0x4d   : > { %s178_s21 = sshll.u32 %s174_s18, 4  ;;  %s386_s13 = scalar_lea.hbm %s626_s1, 40  ;;  %s179_s21 = int_to_ptr.hbm [resolvable:$true] %s178_s21 }
  0x4e   : > { %s380_s20 = sshra.s32 %s179_s21, 4  ;;  %s381_s20 = int_to_ptr.hbm [resolvable:$true] %s380_s20 }
  0x4f   : > { %s382_s29 = scalar_lea.hbm %s381_s20, 8  ;;  %p387_p11 = scmp.lt.s32.totalorder %s381_s20, %s626_s1 }
  0x50   : > { %p383_p8 = scmp.ne.s32.totalorder %s381_s20, %s382_s29  ;;  %p388_p6 = scmp.lt.s32.totalorder %s386_s13, %s382_s29 }
  0x52   : > { %p384_p9 = pnand %p383_p8, %p541_p0  ;;  %p389_p12 = por %p388_p6, %p387_p11 }
  0x54   : > { %p385_p10 = pneg %p384_p9 }
  0x56   : > { %p390_p13 = pnand %p389_p12, %p385_p10 }
  0x58   : > { %393 = shalt.err (!%p390_p13)
}
  0x59   : > { %267 = dma.vmem_to_hbm [thread:$0]  (%p541_p0), %s177_s17, 128, %s179_s21, %s164_s24  }
  0x5a PF: > { %p278_p1 = scmp.ge.s32.totalorder %s456_s12, 2  ;;  %s190_s4 = sand.u32 1, %s432_s6  }
  0x5b   : > { %s191_s5 = scalar_lea.sflag [#allocation4], %s190_s4 }
  0x5c   : > { %p274_p7 = pnand %p278_p1, %p546_p2 }
  0x5e   : > { %p275_p3 = pneg %p274_p7 }
  0x60   : > { %427 = dma.done.wait (%p275_p3), %s191_s5, 128  }
  0x61   : > { %429 = vsyncadd (%p275_p3), %s191_s5, 4294967168  ;;  %p14_p0 = scmp.ge.s32.totalorder %s507_s15, 7   ;;  %s632_s6 = smov %s436_s7 }
  0x62   : > { %s633_s7 = smov %s440_s8  ;;  %s634_s8 = smov %s536_s25 }
  0x63   : > { %s635_s9 = smov %s448_s10  ;;  %s636_s10 = smov %s452_s11 }
  0x64   : > { %s637_s11 = smov %s526_s22  ;;  %s638_s12 = smov %s507_s15 }
  0x65   :  { %16 = sbr.rel (!%p14_p0) target bundleno = 7 (0x7), region = 81 }
  0x6a   :  { %197 = vsyncpa [#allocation3], 1 }
  0x6b   :  { %199 = vsyncpa [#allocation3 + $0x1], 1 }
  0x6c   :  { %200 = vsyncpa [#allocation4], 1 }
  0x6d   :  { %202 = vsyncpa [#allocation4 + $0x1], 1 }

</bundles_post_ra>
